<compile_context>
chip_gen: v6e
topology: v6e:2x2x1
jax: 0.10.0
libtpu: 0.0.40
codegen_flags: <defaults>
</compile_context>

<pallas_src>
import functools
import math

import jax
import jax.numpy as jnp
from jax.experimental import pallas as pl
from jax.experimental.pallas import tpu as pltpu


def _round_up(v, m):
    return ((v + m - 1) // m) * m


# --------------------------------------------------------------------------
# Kernels
# --------------------------------------------------------------------------
def _attention_kernel(x_ref, wvu_ref, bvu_ref, ww_ref, bw_ref, out_ref, *,
                      D, apply_softmax):
    """One N-tile of instances: fused V/U projection, gating, (K, TN) logits.

    If apply_softmax is True the tile covers the full N axis and the softmax
    over N is applied in-kernel (no second pass)."""
    # Cast x tile to bf16 *in-kernel* (VPU) -> x stays f32 in HBM, no extra copy.
    x_bf16 = x_ref[...].astype(jnp.bfloat16)

    # Fused projection: (TN, L) @ (L, 2D) -> (TN, 2D), f32 accumulation.
    proj = jnp.dot(x_bf16, wvu_ref[...],
                   preferred_element_type=jnp.float32) + bvu_ref[...]

    a_v = jnp.tanh(proj[:, :D])                       # (TN, D)  f32
    a_u = jax.nn.sigmoid(proj[:, D:])                 # (TN, D)  f32
    gated = (a_v * a_u).astype(jnp.bfloat16)          # (TN, D)  bf16 MXU operand

    # einsum('kd,nd->kn'): contract D of Ww against D of gated -> (K, TN).
    # Produces the transposed result directly: lane-dense along N, no transpose.
    logits = jax.lax.dot_general(
        ww_ref[...], gated,
        dimension_numbers=(((1,), (1,)), ((), ())),
        preferred_element_type=jnp.float32)           # (K, TN)
    logits = logits + bw_ref[...]

    if apply_softmax:
        # Tile covers the full (valid) N axis -> safe to reduce over axis 1.
        logits = logits - jnp.max(logits, axis=1, keepdims=True)
        e = jnp.exp(logits)
        logits = e / jnp.sum(e, axis=1, keepdims=True)

    out_ref[...] = logits.astype(out_ref.dtype)


def _softmax_rows_kernel(a_ref, out_ref):
    """Row-wise softmax on a (BR, C) tile (each row independent)."""
    a = a_ref[...]
    a = a - jnp.max(a, axis=1, keepdims=True)
    e = jnp.exp(a)
    out_ref[...] = e / jnp.sum(e, axis=1, keepdims=True)


# --------------------------------------------------------------------------
# Wrappers
# --------------------------------------------------------------------------
def pack_attention_params(wv, bv, wu, bu, ww, bw, matmul_dtype=jnp.bfloat16):
    """One-time weight packing (hoist out of the per-call hot path).
    PyTorch nn.Linear layouts: wv/wu (D, L), bv/bu (D,), ww (K, D), bw (K,)."""
    D, L = wv.shape
    K = ww.shape[0]
    assert wu.shape == (D, L) and bv.shape == (D,) and bu.shape == (D,)
    assert ww.shape == (K, D) and bw.shape == (K,)
    w_vu = jnp.concatenate([wv, wu], axis=0).T.astype(matmul_dtype)   # (L, 2D)
    b_vu = jnp.concatenate([bv, bu])[None, :].astype(jnp.float32)     # (1, 2D)
    ww_m = ww.astype(matmul_dtype)                                    # (K, D)
    bw_c = bw.astype(jnp.float32)[:, None]                            # (K, 1)
    return (w_vu, b_vu, ww_m, bw_c)


def _softmax_rows(a, *, block_r=512):
    """Row-wise softmax on a 2-D f32 array, tiled over rows (rows independent)."""
    R, C = a.shape
    br = R if R <= block_r else block_r
    return pl.pallas_call(
        _softmax_rows_kernel,
        out_shape=jax.ShapeDtypeStruct((R, C), jnp.float32),
        grid_spec=pltpu.PrefetchScalarGridSpec(
            num_scalar_prefetch=0,
            grid=(pl.cdiv(R, br),),
            in_specs=[pl.BlockSpec((br, C), lambda i: (i, 0))],
            out_specs=pl.BlockSpec((br, C), lambda i: (i, 0)),
        ),
        compiler_params=pltpu.CompilerParams(dimension_semantics=("parallel",)),
    )(a)


def attention_gated(x, packed_params, isNorm=True, *, block_n=2048):
    """Single bag. x: (N, L) f32. packed_params from pack_attention_params.
    Returns (K, N): raw logits if isNorm=False, softmax over N otherwise."""
    w_vu, b_vu, ww_m, bw_c = packed_params
    M, L = x.shape
    two_d = w_vu.shape[1]
    D = two_d // 2
    K = ww_m.shape[0]
    assert w_vu.shape[0] == L

    # Fuse the softmax whenever the whole bag fits one grid step (the common
    # case): saves a second pallas_call + a (K, N) HBM round trip.  Trade-off:
    # a single grid step can't be megacore-sharded on v7x; for bags that large
    # the non-fused tiled path below is used anyway.
    fuse_softmax = bool(isNorm) and M <= block_n

    if fuse_softmax:
        tn = M                      # block == full array -> no padded columns
        semantics = ("arbitrary",)
    elif M <= 128:
        tn = M                      # full coverage, single step
        semantics = ("arbitrary",)
    elif M <= block_n:
        # Split >=2 ways (128-aligned) so v7x's two TensorCores both get work.
        tn = min(block_n, max(128, _round_up(pl.cdiv(M, 2), 128)))
        semantics = ("parallel",)
    else:
        tn = block_n
        semantics = ("parallel",)

    kernel = functools.partial(_attention_kernel, D=D,
                               apply_softmax=fuse_softmax)
    out = pl.pallas_call(
        kernel,
        out_shape=jax.ShapeDtypeStruct((K, M), jnp.float32),
        grid_spec=pltpu.PrefetchScalarGridSpec(
            num_scalar_prefetch=0,
            grid=(pl.cdiv(M, tn),),
            in_specs=[
                pl.BlockSpec((tn, L), lambda i: (i, 0)),       # x tile (f32)
                pl.BlockSpec((L, two_d), lambda i: (0, 0)),    # fused Wv|Wu (bf16)
                pl.BlockSpec((1, two_d), lambda i: (0, 0)),    # fused bv|bu (f32)
                pl.BlockSpec((K, D), lambda i: (0, 0)),        # Ww (bf16)
                pl.BlockSpec((K, 1), lambda i: (0, 0)),        # bw (f32)
            ],
            out_specs=pl.BlockSpec((K, tn), lambda i: (0, i)),
        ),
        compiler_params=pltpu.CompilerParams(dimension_semantics=semantics),
    )(x, w_vu, b_vu, ww_m, bw_c)

    if isNorm and not fuse_softmax:
        out = _softmax_rows(out)
    return out


def attention_gated_batched(x, packed_params, isNorm=True, *, block_n=2048):
    """Many pseudo-bags at once. x: (B, N, L) f32. Returns (B, K, N).
    The B*N rows are flattened into ONE projection matmul (>=128 MXU rows);
    per-bag softmax semantics over each bag's N instances are preserved."""
    B, N, L = x.shape
    K = packed_params[2].shape[0]
    logits = attention_gated(x.reshape(B * N, L), packed_params,
                             isNorm=False, block_n=block_n)        # (K, B*N)
    if isNorm:
        # (K, B*N) and (K*B, N) share the same row-major layout -> free reshape;
        # softmax per bag, then lay out as (B, K, N).
        sm = _softmax_rows(logits.reshape(K * B, N))
        return sm.reshape(K, B, N).transpose(1, 0, 2)
    return logits.reshape(K, B, N).transpose(1, 0, 2)


# --------------------------------------------------------------------------
# Reference (mirrors kernel numerics: bf16 MXU operands, f32 accumulation)
# --------------------------------------------------------------------------
def _reference(x, wv, bv, wu, bu, ww, bw, isNorm=True,
               matmul_dtype=jnp.float32):
    xd = x.astype(matmul_dtype)
    a_v = jnp.tanh(jnp.dot(xd, wv.astype(matmul_dtype).T,
                           preferred_element_type=jnp.float32) + bv[None, :])
    a_u = jax.nn.sigmoid(jnp.dot(xd, wu.astype(matmul_dtype).T,
                                 preferred_element_type=jnp.float32) + bu[None, :])
    g = (a_v * a_u).astype(matmul_dtype)
    a = jnp.dot(g, ww.astype(matmul_dtype).T,
                preferred_element_type=jnp.float32) + bw[None, :]
    a = a.T
    if isNorm:
        a = jax.nn.softmax(a, axis=1)
    return a


def _init_linear(key, fan_in, fan_out):
    # PyTorch nn.Linear default init: U(-1/sqrt(fan_in), +1/sqrt(fan_in)),
    # weight layout (out, in), bias (out,).
    kw, kb = jax.random.split(key)
    bound = 1.0 / math.sqrt(float(fan_in))
    w = jax.random.uniform(kw, (fan_out, fan_in), jnp.float32, -bound, bound)
    b = jax.random.uniform(kb, (fan_out,), jnp.float32, -bound, bound)
    return w, b


if __name__ == "__main__":
    # Shapes consistent with the module defaults: L=512, D=128, K=1,
    # bag size N=8, plus a batched test with B=16 pseudo-bags (128 MXU rows).
    L, D, K = 512, 128, 1
    N, B = 8, 16

    key = jax.random.PRNGKey(0)
    kx, kxb, kv, ku, kw = jax.random.split(key, 5)

    x = jax.random.normal(kx, (N, L), jnp.float32)
    xb = jax.random.normal(kxb, (B, N, L), jnp.float32)
    wv, bv = _init_linear(kv, L, D)
    wu, bu = _init_linear(ku, L, D)
    ww, bw = _init_linear(kw, D, K)

    # Weight packing hoisted: done once, reused by every call below.
    packed = pack_attention_params(wv, bv, wu, bu, ww, bw)

    # --- single bag, softmax normalized (fused-softmax path) ---
    out = jax.block_until_ready(attention_gated(x, packed, isNorm=True))
    ref = _reference(x, wv, bv, wu, bu, ww, bw, True, matmul_dtype=jnp.bfloat16)
    assert out.shape == (K, N), out.shape
    assert jnp.allclose(out, ref, atol=2e-3, rtol=2e-3), (
        f"softmax max abs err {jnp.max(jnp.abs(out - ref))}")

    # --- single bag, raw logits (isNorm=False path) ---
    out_raw = jax.block_until_ready(attention_gated(x, packed, isNorm=False))
    ref_raw = _reference(x, wv, bv, wu, bu, ww, bw, False,
                         matmul_dtype=jnp.bfloat16)
    assert jnp.allclose(out_raw, ref_raw, atol=5e-3, rtol=5e-3), (
        f"logits max abs err {jnp.max(jnp.abs(out_raw - ref_raw))}")

    # --- batched pseudo-bags (per-bag softmax preserved) ---
    out_b = jax.block_until_ready(
        attention_gated_batched(xb, packed, isNorm=True))
    ref_b = jnp.stack([
        _reference(xb[b], wv, bv, wu, bu, ww, bw, True, jnp.bfloat16)
        for b in range(B)])
    assert out_b.shape == (B, K, N), out_b.shape
    assert jnp.allclose(out_b, ref_b, atol=2e-3, rtol=2e-3), (
        f"batched max abs err {jnp.max(jnp.abs(out_b - ref_b))}")

    print("KERNEL_OK")
</pallas_src>

<mosaic_0001>
module attributes {stable_mosaic.version = 11 : i64} {
  func.func @_attention_kernel(%arg0: i32, %arg1: memref<8x512xf32, #tpu.memory_space<vmem>>, %arg2: memref<512x256xbf16, #tpu.memory_space<vmem>>, %arg3: memref<1x256xf32, #tpu.memory_space<vmem>>, %arg4: memref<1x128xbf16, #tpu.memory_space<vmem>>, %arg5: memref<1x1xf32, #tpu.memory_space<vmem>>, %arg6: memref<1x8xf32, #tpu.memory_space<vmem>>) attributes {dimension_semantics = [#tpu.dimension_semantics<arbitrary>], iteration_bounds = array<i64: 1>, scalar_prefetch = 0 : i64, scratch_operands = 0 : i64, tpu.core_type = #tpu.core_type<tc>, window_params = [{transform_indices = @transform_0, window_bounds = array<i64: 8, 512>}, {pipeline_mode = #tpu.pipeline_mode<synchronous>, transform_indices = @transform_1, window_bounds = array<i64: 512, 256>}, {pipeline_mode = #tpu.pipeline_mode<synchronous>, transform_indices = @transform_2, window_bounds = array<i64: 1, 256>}, {pipeline_mode = #tpu.pipeline_mode<synchronous>, transform_indices = @transform_3, window_bounds = array<i64: 1, 128>}, {pipeline_mode = #tpu.pipeline_mode<synchronous>, transform_indices = @transform_4, window_bounds = array<i64: 1, 1>}, {transform_indices = @transform_5, window_bounds = array<i64: 1, 8>}]} {
    %c0 = arith.constant 0 : index
    %c0_0 = arith.constant 0 : index
    %0 = vector.load %arg1[%c0, %c0_0] : memref<8x512xf32, #tpu.memory_space<vmem>>, vector<8x512xf32>
    %1 = arith.truncf %0 : vector<8x512xf32> to vector<8x512xbf16>
    %c0_1 = arith.constant 0 : index
    %c0_2 = arith.constant 0 : index
    %2 = vector.load %arg2[%c0_1, %c0_2] : memref<512x256xbf16, #tpu.memory_space<vmem>>, vector<512x256xbf16>
    %cst = arith.constant dense<0.000000e+00> : vector<8x256xf32>
    %3 = tpu.matmul %1, %2, %cst {dimension_numbers = #tpu.dot_dimension_numbers<[1], [0], [0], [1], [0, 0, 1, 1], [], []>} : vector<8x512xbf16>, vector<512x256xbf16>, vector<8x256xf32> -> vector<8x256xf32>
    %c0_3 = arith.constant 0 : index
    %c0_4 = arith.constant 0 : index
    %4 = vector.load %arg3[%c0_3, %c0_4] : memref<1x256xf32, #tpu.memory_space<vmem>>, vector<1x256xf32>
    %5 = vector.broadcast %4 : vector<1x256xf32> to vector<8x256xf32>
    %6 = arith.addf %3, %5 : vector<8x256xf32>
    %7 = vector.extract_strided_slice %6 {offsets = [0, 0], sizes = [8, 128], strides = [1, 1]} : vector<8x256xf32> to vector<8x128xf32>
    %8 = math.tanh %7 : vector<8x128xf32>
    %9 = vector.extract_strided_slice %6 {offsets = [0, 128], sizes = [8, 128], strides = [1, 1]} : vector<8x256xf32> to vector<8x128xf32>
    %10 = arith.negf %9 : vector<8x128xf32>
    %11 = math.exp %10 : vector<8x128xf32>
    %cst_5 = arith.constant 1.000000e+00 : f32
    %12 = vector.broadcast %cst_5 : f32 to vector<8x128xf32>
    %13 = arith.addf %12, %11 : vector<8x128xf32>
    %14 = arith.divf %12, %13 : vector<8x128xf32>
    %15 = arith.mulf %8, %14 : vector<8x128xf32>
    %16 = arith.truncf %15 : vector<8x128xf32> to vector<8x128xbf16>
    %c0_6 = arith.constant 0 : index
    %c0_7 = arith.constant 0 : index
    %17 = vector.load %arg4[%c0_6, %c0_7] : memref<1x128xbf16, #tpu.memory_space<vmem>>, vector<1x128xbf16>
    %cst_8 = arith.constant dense<0.000000e+00> : vector<1x8xf32>
    %18 = tpu.matmul %17, %16, %cst_8 {dimension_numbers = #tpu.dot_dimension_numbers<[1], [1], [0], [0], [0, 0, 1, 0], [], []>} : vector<1x128xbf16>, vector<8x128xbf16>, vector<1x8xf32> -> vector<1x8xf32>
    %c0_9 = arith.constant 0 : index
    %c0_10 = arith.constant 0 : index
    %19 = vector.load %arg5[%c0_9, %c0_10] : memref<1x1xf32, #tpu.memory_space<vmem>>, vector<1x1xf32>
    %20 = vector.broadcast %19 : vector<1x1xf32> to vector<1x8xf32>
    %21 = arith.addf %18, %20 : vector<1x8xf32>
    %cst_11 = arith.constant dense<0xFF800000> : vector<1xf32>
    %22 = vector.multi_reduction <maximumf>, %21, %cst_11 [1] : vector<1x8xf32> to vector<1xf32>
    %23 = vector.shape_cast %22 : vector<1xf32> to vector<1x1xf32>
    %24 = vector.broadcast %23 : vector<1x1xf32> to vector<1x8xf32>
    %25 = arith.subf %21, %24 : vector<1x8xf32>
    %26 = math.exp %25 : vector<1x8xf32>
    %cst_12 = arith.constant dense<0.000000e+00> : vector<1xf32>
    %27 = vector.multi_reduction <add>, %26, %cst_12 [1] : vector<1x8xf32> to vector<1xf32>
    %28 = vector.shape_cast %27 : vector<1xf32> to vector<1x1xf32>
    %29 = vector.broadcast %28 : vector<1x1xf32> to vector<1x8xf32>
    %30 = arith.divf %26, %29 : vector<1x8xf32>
    %c0_13 = arith.constant 0 : index
    %c0_14 = arith.constant 0 : index
    %31 = vector.load %arg6[%c0_13, %c0_14] : memref<1x8xf32, #tpu.memory_space<vmem>>, vector<1x8xf32>
    tpu.vector_store %arg6[%c0_13, %c0_14], %30 {strides = array<i32>} : memref<1x8xf32, #tpu.memory_space<vmem>>, vector<1x8xf32>,
    return
  }
  func.func @transform_0(%arg0: i32) -> (i32, i32) {
    %c0_i32 = arith.constant 0 : i32
    %c0_i32_0 = arith.constant 0 : i32
    return %arg0, %c0_i32 : i32, i32
  }
  func.func @transform_1(%arg0: i32) -> (i32, i32) {
    %c0_i32 = arith.constant 0 : i32
    %c0_i32_0 = arith.constant 0 : i32
    %c0_i32_1 = arith.constant 0 : i32
    return %c0_i32, %c0_i32_0 : i32, i32
  }
  func.func @transform_2(%arg0: i32) -> (i32, i32) {
    %c0_i32 = arith.constant 0 : i32
    %c0_i32_0 = arith.constant 0 : i32
    %c0_i32_1 = arith.constant 0 : i32
    return %c0_i32, %c0_i32_0 : i32, i32
  }
  func.func @transform_3(%arg0: i32) -> (i32, i32) {
    %c0_i32 = arith.constant 0 : i32
    %c0_i32_0 = arith.constant 0 : i32
    %c0_i32_1 = arith.constant 0 : i32
    return %c0_i32, %c0_i32_0 : i32, i32
  }
  func.func @transform_4(%arg0: i32) -> (i32, i32) {
    %c0_i32 = arith.constant 0 : i32
    %c0_i32_0 = arith.constant 0 : i32
    %c0_i32_1 = arith.constant 0 : i32
    return %c0_i32, %c0_i32_0 : i32, i32
  }
  func.func @transform_5(%arg0: i32) -> (i32, i32) {
    %c0_i32 = arith.constant 0 : i32
    %c0_i32_0 = arith.constant 0 : i32
    return %c0_i32, %arg0 : i32, i32
  }
}

</mosaic_0001>

<bundles_post_ra>
// kernel: tpu_custom_call.1
= control target key start
LH: loop header
LB: loop body
LE: loop exit
PB: predicated region body
PF: predicated region fallthrough
CT: control target
= control target key end

     0   :  { %s938_s0 = inlined_call_operand.hbm [shape: f32[8,512], index: 0, kind: input, shape index: {}]   ;;  %s939_s1 = inlined_call_operand.hbm [shape: bf16[512,256], index: 1, kind: input, shape index: {}]   ;;  %s940_s2 = inlined_call_operand.vmem [shape: f32[1,256], index: 2, kind: input, shape index: {}]   ;;  %s941_s3 = inlined_call_operand.vmem [shape: bf16[1,128], index: 3, kind: input, shape index: {}]   ;;  %s942_s4 = inlined_call_operand.<no memory space> [shape: f32[1,1], index: 4, kind: input, shape index: {}]   ;;  %s943_s5 = inlined_call_operand.hbm [shape: f32[1,8], index: 5, kind: output, shape index: {}]  }
   0x1   :  { %v10_v0 = vstv %s942_s4 }
   0x2   :  { %11 = vst [vmem:[#allocation2] sm:$0x1] %v10_v0 }
   0x3   :  { %12 = vsyncpa [#allocation4], 0 }
   0x4   :  { %13 = vsyncpa [#allocation7], 0 }
   0x5   :  { %14 = vsyncpa [#allocation5], 0  ;;  %s879_s20 = smov [#allocation3]   ;;  %s880_s22 = smov [#allocation6]  }
   0x6   :  { %s21_s21 = sshll.u32 %s879_s20, 4  ;;  %s30_s23 = sshll.u32 %s880_s22, 4  ;;  %s22_s21 = int_to_ptr.vmem [resolvable:$true] %s21_s21  ;;  %s31_s23 = int_to_ptr.vmem [resolvable:$true] %s30_s23 }
   0x7   :  { %s821_s24 = scalar_lea.vmem %s22_s21, 512  ;;  %p826_p1 = scmp.lt.s32.totalorder %s22_s21, %s22_s21 }
   0x8   :  { %p822_p0 = scmp.ne.s32.totalorder %s22_s21, %s821_s24  ;;  %p827_p2 = scmp.lt.s32.totalorder %s821_s24, %s821_s24 }
   0xa   :  { %p828_p3 = por %p827_p2, %p826_p1 }
   0xc   :  { %p829_p4 = pnand %p828_p3, %p822_p0 }
   0xe   :  { %832 = shalt.err (!%p829_p4)
}
   0xf   :  { %24 = dma.hbm_to_vmem [thread:$0]  %s938_s0, 512, %s22_s21, [#allocation4]  }
  0x10   :  { %s841_s4 = scalar_lea.vmem %s31_s23, 8192  ;;  %p846_p6 = scmp.lt.s32.totalorder %s31_s23, %s31_s23 }
  0x11   :  { %p842_p5 = scmp.ne.s32.totalorder %s31_s23, %s841_s4  ;;  %p847_p7 = scmp.lt.s32.totalorder %s841_s4, %s841_s4 }
  0x13   :  { %p848_p8 = por %p847_p7, %p846_p6 }
  0x15   :  { %p849_p9 = pnand %p848_p8, %p842_p5 }
  0x17   :  { %852 = shalt.err (!%p849_p9)
}
  0x18   :  { %s881_s27 = smov 128   ;;  %s882_s28 = smov 8  }
  0x19   :  { %36 = dma.hbm_to_vmem [thread:$0]  %s939_s1, 8192, %s31_s23, [#allocation7], %s881_s27, %s881_s27, %s882_s28  }
  0x1a   :  { %873 = dma.done.wait [#allocation4], 512  }
  0x1b   :  { %874 = vsyncadd [#allocation4], 4294966784 }
  0x1c   :  { %875 = dma.done.wait [#allocation7], 8192  }
  0x1d   :  { %876 = vsyncadd [#allocation7], 4294959104  ;;  %v707_v1 = vld [vmem:[#allocation6 + $0x74] ss:$8 sps:$4 sm:$0xff]   ;;  %v711_v3 = vld [vmem:[#allocation6 + $0x70] ss:$8 sps:$4 sm:$0xff]  }
  0x1e   :  { %v709_v2 = vld [vmem:[#allocation6 + $0x174] ss:$8 sps:$4 sm:$0xff]   ;;  %454 = vmatprep.subr.bf16.mxu0 %v707_v1  ;;  %v712_v4 = vld [vmem:[#allocation6 + $0x170] ss:$8 sps:$4 sm:$0xff]   ;;  %v713_v5 = vld [vmem:[#allocation6 + $0x64] ss:$8 sps:$4 sm:$0xff]  }
  0x1f   :  { %495 = vmatprep.subr.bf16.mxu1 %v709_v2  ;;  %455 = vmatpush1.bf16.msra.mxu0 %v711_v3  ;;  %v715_v6 = vld [vmem:[#allocation6 + $0x164] ss:$8 sps:$4 sm:$0xff]   ;;  %v717_v7 = vld [vmem:[#allocation6 + $0x60] ss:$8 sps:$4 sm:$0xff]   ;;  %v719_v9 = vld [vmem:[#allocation6 + $0x54] ss:$8 sps:$4 sm:$0xff]  }
  0x20   :  { %496 = vmatpush1.bf16.msra.mxu1 %v712_v4  ;;  %456 = vmatprep.subr.bf16.mxu0 %v713_v5  ;;  %v718_v8 = vld [vmem:[#allocation6 + $0x160] ss:$8 sps:$4 sm:$0xff]   ;;  %v721_v10 = vld [vmem:[#allocation6 + $0x154] ss:$8 sps:$4 sm:$0xff]   ;;  %v723_v11 = vld [vmem:[#allocation6 + $0x50] ss:$8 sps:$4 sm:$0xff]  }
  0x21   :  { %497 = vmatprep.subr.bf16.mxu1 %v715_v6  ;;  %v724_v12 = vld [vmem:[#allocation6 + $0x150] ss:$8 sps:$4 sm:$0xff]   ;;  %v725_v13 = vld [vmem:[#allocation6 + $0x44] ss:$8 sps:$4 sm:$0xff]   ;;  %v729_v15 = vld [vmem:[#allocation6 + $0x40] ss:$8 sps:$4 sm:$0xff]  }
  0x22   :  { %v727_v14 = vld [vmem:[#allocation6 + $0x144] ss:$8 sps:$4 sm:$0xff]   ;;  %v730_v16 = vld [vmem:[#allocation6 + $0x140] ss:$8 sps:$4 sm:$0xff]   ;;  %v731_v17 = vld [vmem:[#allocation6 + $0x34] ss:$8 sps:$4 sm:$0xff]  }
  0x23   :  { %457 = vmatpush1.bf16.msra.mxu0 %v717_v7  ;;  %v733_v18 = vld [vmem:[#allocation6 + $0x134] ss:$8 sps:$4 sm:$0xff]   ;;  %v735_v19 = vld [vmem:[#allocation6 + $0x30] ss:$8 sps:$4 sm:$0xff]   ;;  %v737_v21 = vld [vmem:[#allocation6 + $0x24] ss:$8 sps:$4 sm:$0xff]  }
  0x24   :  { %498 = vmatpush1.bf16.msra.mxu1 %v718_v8  ;;  %458 = vmatprep.subr.bf16.mxu0 %v719_v9  ;;  %v736_v20 = vld [vmem:[#allocation6 + $0x130] ss:$8 sps:$4 sm:$0xff]   ;;  %v739_v22 = vld [vmem:[#allocation6 + $0x124] ss:$8 sps:$4 sm:$0xff]   ;;  %v741_v23 = vld [vmem:[#allocation6 + $0x20] ss:$8 sps:$4 sm:$0xff]  }
  0x25   :  { %499 = vmatprep.subr.bf16.mxu1 %v721_v10  ;;  %v742_v24 = vld [vmem:[#allocation6 + $0x120] ss:$8 sps:$4 sm:$0xff]   ;;  %v743_v25 = vld [vmem:[#allocation6 + $0x14] ss:$8 sps:$4 sm:$0xff]   ;;  %v747_v27 = vld [vmem:[#allocation6 + $0x10] ss:$8 sps:$4 sm:$0xff]  }
  0x26   :  { %v745_v26 = vld [vmem:[#allocation6 + $0x114] ss:$8 sps:$4 sm:$0xff]   ;;  %v748_v28 = vld [vmem:[#allocation6 + $0x110] ss:$8 sps:$4 sm:$0xff]   ;;  %v749_v29 = vld [vmem:[#allocation6 + $0x4] ss:$8 sps:$4 sm:$0xff]  }
  0x27   :  { %459 = vmatpush1.bf16.msra.mxu0 %v723_v11  ;;  %v751_v30 = vld [vmem:[#allocation6 + $0x104] ss:$8 sps:$4 sm:$0xff]   ;;  %v753_v31 = vld [vmem:[#allocation6] ss:$8 sps:$4 sm:$0xff]   ;;  %v755_v33 = vld [vmem:[#allocation6 + $0xf4] ss:$8 sps:$4 sm:$0xff]  }
  0x28   :  { %500 = vmatpush1.bf16.msra.mxu1 %v724_v12  ;;  %460 = vmatprep.subr.bf16.mxu0 %v725_v13  ;;  %v754_v32 = vld [vmem:[#allocation6 + $0x100] ss:$8 sps:$4 sm:$0xff]   ;;  %v757_v34 = vld [vmem:[#allocation6 + $0x1f4] ss:$8 sps:$4 sm:$0xff]   ;;  %v759_v35 = vld [vmem:[#allocation6 + $0xf0] ss:$8 sps:$4 sm:$0xff]   ;;  %v124_v12 = vlaneseq }
  0x29   :  { %501 = vmatprep.subr.bf16.mxu1 %v727_v14  ;;  %v760_v36 = vld [vmem:[#allocation6 + $0x1f0] ss:$8 sps:$4 sm:$0xff]   ;;  %v761_v37 = vld [vmem:[#allocation6 + $0xe4] ss:$8 sps:$4 sm:$0xff]   ;;  %v765_v39 = vld [vmem:[#allocation6 + $0xe0] ss:$8 sps:$4 sm:$0xff]  }
  0x2a   :  { %v763_v38 = vld [vmem:[#allocation6 + $0x1e4] ss:$8 sps:$4 sm:$0xff]   ;;  %v766_v40 = vld [vmem:[#allocation6 + $0x1e0] ss:$8 sps:$4 sm:$0xff]   ;;  %v767_v41 = vld [vmem:[#allocation6 + $0xd4] ss:$8 sps:$4 sm:$0xff]  }
  0x2b   :  { %461 = vmatpush1.bf16.msra.mxu0 %v729_v15  ;;  %v769_v42 = vld [vmem:[#allocation6 + $0x1d4] ss:$8 sps:$4 sm:$0xff]   ;;  %v771_v43 = vld [vmem:[#allocation6 + $0xd0] ss:$8 sps:$4 sm:$0xff]   ;;  %v773_v45 = vld [vmem:[#allocation6 + $0xc4] ss:$8 sps:$4 sm:$0xff]  }
  0x2c   :  { %502 = vmatpush1.bf16.msra.mxu1 %v730_v16  ;;  %462 = vmatprep.subr.bf16.mxu0 %v731_v17  ;;  %v772_v44 = vld [vmem:[#allocation6 + $0x1d0] ss:$8 sps:$4 sm:$0xff]   ;;  %v775_v46 = vld [vmem:[#allocation6 + $0x1c4] ss:$8 sps:$4 sm:$0xff]   ;;  %v777_v50 = vld [vmem:[#allocation6 + $0xc0] ss:$8 sps:$4 sm:$0xff]  }
  0x2d   :  { %503 = vmatprep.subr.bf16.mxu1 %v733_v18  ;;  %v51_v47 = vld [vmem:[#allocation3 + $0x8] sm:$0xff]  ;;  %v53_v49 = vld [vmem:[#allocation3 + $0x18] sm:$0xff]  ;;  %v50_v5 = vld [vmem:[#allocation3] sm:$0xff]  ;;  %v883_v9 = vmov 0.0   ;;  %vm884_vm0 = vmmov 0   ;;  %v885_v11 = vmov 0  }
  0x2e   :  { %v55_v48 = vpack.c.bf16 %v51_v47, %v51_v47  ;;  %v778_v51 = vld [vmem:[#allocation6 + $0x1c0] ss:$8 sps:$4 sm:$0xff]   ;;  %v57_v52 = vpack.c.bf16 %v53_v49, %v53_v49  ;;  %v779_v53 = vld [vmem:[#allocation6 + $0xb4] ss:$8 sps:$4 sm:$0xff]   ;;  %v783_v55 = vld [vmem:[#allocation6 + $0xb0] ss:$8 sps:$4 sm:$0xff]   ;;  %v54_v7 = vpack.c.bf16 %v50_v5, %v50_v5  ;;  %706 = vset.pattern.permute.xlu0 %v885_v11 }
  0x2f   :  { %463 = vmatpush1.bf16.msra.mxu0 %v735_v19  ;;  %v781_v54 = vld [vmem:[#allocation6 + $0x1b4] ss:$8 sps:$4 sm:$0xff]   ;;  %v784_v56 = vld [vmem:[#allocation6 + $0x1b0] ss:$8 sps:$4 sm:$0xff]   ;;  %v785_v57 = vld [vmem:[#allocation6 + $0xa4] ss:$8 sps:$4 sm:$0xff]  }
  0x30   :  { %504 = vmatpush1.bf16.msra.mxu1 %v736_v20  ;;  %464 = vmatprep.subr.bf16.mxu0 %v737_v21  ;;  %v787_v58 = vld [vmem:[#allocation6 + $0x1a4] ss:$8 sps:$4 sm:$0xff]   ;;  %v789_v59 = vld [vmem:[#allocation6 + $0xa0] ss:$8 sps:$4 sm:$0xff]   ;;  %v791_v61 = vld [vmem:[#allocation6 + $0x94] ss:$8 sps:$4 sm:$0xff]  }
  0x31   :  { %505 = vmatprep.subr.bf16.mxu1 %v739_v22  ;;  %486 = vmatprep.mubr.bf16.mxu0 %v55_v48  ;;  %v790_v60 = vld [vmem:[#allocation6 + $0x1a0] ss:$8 sps:$4 sm:$0xff]   ;;  %v793_v62 = vld [vmem:[#allocation6 + $0x194] ss:$8 sps:$4 sm:$0xff]   ;;  %v795_v63 = vld [vmem:[#allocation6 + $0x90] ss:$8 sps:$4 sm:$0xff]  }
  0x32   :  { %527 = vmatprep.mubr.bf16.mxu1 %v57_v52  ;;  %v796_v0 = vld [vmem:[#allocation6 + $0x190] ss:$8 sps:$4 sm:$0xff]   ;;  %v797_v1 = vld [vmem:[#allocation6 + $0x84] ss:$8 sps:$4 sm:$0xff]   ;;  %v801_v3 = vld [vmem:[#allocation6 + $0x80] ss:$8 sps:$4 sm:$0xff]  }
  0x33   :  { %465 = vmatpush1.bf16.msra.mxu0 %v741_v23  ;;  %v799_v2 = vld [vmem:[#allocation6 + $0x184] ss:$8 sps:$4 sm:$0xff]   ;;  %v802_v4 = vld [vmem:[#allocation6 + $0x180] ss:$8 sps:$4 sm:$0xff]   ;;  %v52_v6 = vld [vmem:[#allocation3 + $0x10] sm:$0xff]  ;;  %v125_v13 = vshrl.u32 %v124_v12, 7 }
  0x34   :  { %506 = vmatpush1.bf16.msra.mxu1 %v742_v24  ;;  %466 = vmatprep.subr.bf16.mxu0 %v743_v25  ;;  %v56_v8 = vpack.c.bf16 %v52_v6, %v52_v6  ;;  %v546_v10 = vld [vmem:[#allocation2] sm:$0x1]  ;;  %vm596_vm1 = vcmask 57344  }
  0x35   :  { %507 = vmatprep.subr.bf16.mxu1 %v745_v26  ;;  %549 = vperm.xlu0 %706, %v546_v10   ;;  %v130_v14 = vsub.s32 1, %v125_v13  ;;  %v122_v15 = vld [vmem:[%s940_s2] sm:$0x3] }
  0x37   :  { %467 = vmatpush1.bf16.msra.mxu0 %v747_v27  ;;  %v131_v16 = vrot.slane %v122_v15, %v130_v14 }
  0x38   :  { %508 = vmatpush1.bf16.msra.mxu1 %v748_v28  ;;  %468 = vmatprep.subr.bf16.mxu0 %v749_v29  ;;  %v126_v28 = vsub.s32 0, %v125_v13 }
  0x39   :  { %509 = vmatprep.subr.bf16.mxu1 %v751_v30 }
  0x3a   :  { %v127_v29 = vrot.slane %v122_v15, %v126_v28 }
  0x3b   :  { %469 = vmatpush1.bf16.msra.mxu0 %v753_v31 }
  0x3c   :  { %510 = vmatpush1.bf16.msra.mxu1 %v754_v32  ;;  %470 = vmatprep.subr.bf16.mxu0 %v755_v33 }
  0x3d   :  { %511 = vmatprep.subr.bf16.mxu1 %v757_v34 }
  0x3f   :  { %471 = vmatpush2.bf16.msra.mxu0 %v759_v35 }
  0x40   :  { %512 = vmatpush2.bf16.msra.mxu1 %v760_v36  ;;  %472 = vmatprep.subr.bf16.mxu0 %v761_v37 }
  0x41   :  { %513 = vmatprep.subr.bf16.mxu1 %v763_v38  ;;  %v545_v38 = vld [vmem:[%s941_s3] sm:$0x1]  ;;  %s886_s3 = smov [#allocation8]  }
  0x42   :  { %s615_s7 = sshll.u32 %s886_s3, 4  ;;  %s616_s7 = int_to_ptr.vmem [resolvable:$true] %s615_s7 }
  0x43   :  { %473 = vmatpush2.bf16.msra.mxu0 %v765_v39  ;;  %s853_s8 = scalar_lea.vmem %s616_s7, 16  ;;  %s857_s9 = scalar_lea.vmem %s616_s7, 32 }
  0x44   :  { %514 = vmatpush2.bf16.msra.mxu1 %v766_v40  ;;  %474 = vmatprep.subr.bf16.mxu0 %v767_v41  ;;  %p854_p10 = scmp.ne.s32.totalorder %s616_s7, %s853_s8  ;;  %p858_p11 = scmp.lt.s32.totalorder %s616_s7, %s616_s7 }
  0x45   :  { %515 = vmatprep.subr.bf16.mxu1 %v769_v42  ;;  %p859_p12 = scmp.lt.s32.totalorder %s857_s9, %s853_s8 }
  0x47   :  { %475 = vmatpush2.bf16.msra.mxu0 %v771_v43  ;;  %p860_p13 = por %p859_p12, %p858_p11 }
  0x48   :  { %516 = vmatpush2.bf16.msra.mxu1 %v772_v44  ;;  %476 = vmatprep.subr.bf16.mxu0 %v773_v45 }
  0x49   :  { %517 = vmatprep.subr.bf16.mxu1 %v775_v46  ;;  %p861_p0 = pnand %p860_p13, %p854_p10 }
  0x4b   :  { %477 = vmatpush2.bf16.msra.mxu0 %v777_v50 }
  0x4c   :  { %518 = vmatpush2.bf16.msra.mxu1 %v778_v51  ;;  %478 = vmatprep.subr.bf16.mxu0 %v779_v53 }
  0x4d   :  { %519 = vmatprep.subr.bf16.mxu1 %v781_v54 }
  0x4f   :  { %479 = vmatpush2.bf16.msra.mxu0 %v783_v55 }
  0x50   :  { %520 = vmatpush2.bf16.msra.mxu1 %v784_v56  ;;  %480 = vmatprep.subr.bf16.mxu0 %v785_v57 }
  0x51   :  { %521 = vmatprep.subr.bf16.mxu1 %v787_v58 }
  0x53   :  { %481 = vmatpush2.bf16.msra.mxu0 %v789_v59 }
  0x54   :  { %522 = vmatpush2.bf16.msra.mxu1 %v790_v60  ;;  %482 = vmatprep.subr.bf16.mxu0 %v791_v61 }
  0x55   :  { %523 = vmatprep.subr.bf16.mxu1 %v793_v62 }
  0x57   :  { %483 = vmatpush2.bf16.msra.mxu0 %v795_v63 }
  0x58   :  { %524 = vmatpush2.bf16.msra.mxu1 %v796_v0  ;;  %484 = vmatprep.subr.bf16.mxu0 %v797_v1 }
  0x59   :  { %525 = vmatprep.subr.bf16.mxu1 %v799_v2 }
  0x5b   :  { %485 = vmatpush2.bf16.msra.mxu0 %v801_v3 }
  0x5c   :  { %526 = vmatpush2.bf16.msra.mxu1 %v802_v4  ;;  %692 = vmatprep.subr.bf16.mxu0 %v883_v9 }
  0x5e   :  { %487 = vmatmul.mubr.bf16.vlgmr.msra.gmra.mxu0 %v54_v7 }
  0x5f   :  { %528 = vmatmul.mubr.bf16.vlgmr.msra.gmra.mxu1 %v56_v8  ;;  %694 = vmatprep.mubr.msk.bf16.mxu0 %vm884_vm0, %v883_v9 }
  0xb0   :  { %v550_v39 = vpop.permute.xlu0 %549 }
  0xb1   :  { %v555_v40 = vrot.slane %v550_v39, %v126_v28 }
 0x11e   :  { %v488_v17 = vpop.f32.mrf.mxu0 }
 0x11f   :  { %v529_v18 = vpop.f32.mrf.mxu1  ;;  %v489_v30 = vadd.f32 %v488_v17, %v127_v29 }
 0x120   :  { %v490_v19 = vpop.f32.mrf.mxu0 }
 0x121   :  { %v531_v20 = vpop.f32.mrf.mxu1  ;;  %v491_v21 = vadd.f32 %v490_v19, %v131_v16  ;;  %v530_v31 = vadd.f32 %v529_v18, %v489_v30 }
 0x122   :  { %v492_v22 = vpop.f32.mrf.mxu0 }
 0x123   :  { %v533_v23 = vpop.f32.mrf.mxu1  ;;  %v532_v24 = vadd.f32 %v531_v20, %v491_v21 }
 0x124   :  { %v493_v25 = vpop.f32.mrf.mxu0 }
 0x125   :  { %v534_v26 = vpop.f32.mrf.mxu1  ;;  %v689_v27 = vmul.f32 -1.442695, %v532_v24 }
 0x127   :  { %803 = vpow2.f32 %v689_v27 }
 0x128   :  { %805 = vtanh.f32 %v530_v31 }
 0x134   :  { %v804_v32 = vpop.eup %803 }
 0x135   :  { %v540_v33 = vadd.f32 1.0, %v804_v32  ;;  %v806_v34 = vpop.eup %805 }
 0x137   :  { %807 = vrcp.f32 %v540_v33 }
 0x144   :  { %v808_v35 = vpop.eup %807 }
 0x145   :  { %v543_v36 = vmul.f32 %v808_v35, %v806_v34 }
 0x147   :  { %v544_v37 = vpack.c.bf16 %v543_v36, %v543_v36 }
 0x149   :  { %693 = vmatpush3.bf16.xpose.msra.mxu0 %v544_v37 }
 0x150   :  { %695 = vmatmul.mubr.bf16.vlgmr.msra.gmra.mxu0 %v545_v38 }
 0x210   :  { %v590_v41 = vpop.f32.mrf.mxu0 }
 0x211   :  { %v591_v42 = vadd.f32 %v590_v41, %v555_v40 }
 0x212   :  { %v696_v43 = vpop.f32.mrf.mxu0 }
 0x213   :  { %v597_v44 = vsel %vm596_vm1, %v591_v42, -inf }
 0x214   :  { %598 = vmax.xlane.f32.xlu0 %v597_v44  ;;  %v593_v45 = vpop.f32.mrf.mxu0 }
 0x216   :  { %v697_v46 = vpop.f32.mrf.mxu0 }
 0x29d   :  { %v599_v47 = vpop.xlane.xlu0 %598 }
 0x29e   :  { %v600_v48 = vsub.f32 %v591_v42, %v599_v47 }
 0x2a0   :  { %v601_v49 = vmul.f32 1.442695, %v600_v48 }
 0x2a2   :  { %809 = vpow2.f32 %v601_v49 }
 0x2af   :  { %v810_v50 = vpop.eup %809 }
 0x2b0   :  { %v603_v51 = vsel %vm596_vm1, %v810_v50, 0.0 }
 0x2b1   :  { %604 = vadd.xlane.f32.xlu1 %v603_v51 }
 0x33a   :  { %v605_v52 = vpop.xlane.xlu1 %604 }
 0x33b   :  { %811 = vrcp.f32 %v605_v52 }
 0x348   :  { %v812_v53 = vpop.eup %811 }
 0x349   :  { %v607_v54 = vmul.f32 %v812_v53, %v810_v50 }
 0x34b   :  { %608 = vst.msk [vmem:[#allocation8] sm:$0x1] %vm596_vm1, %v607_v54 }
 0x34c   :  { %864 = shalt.err (!%p861_p0)
}
 0x34d   :  { %618 = dma.vmem_to_hbm [thread:$0]  %s616_s7, 16, %s943_s5, [#allocation5]  }
 0x34e   :  { %877 = dma.done.wait [#allocation5], 16  }
 0x34f   :  { %878 = vsyncadd [#allocation5], 4294967280 }
 0x350   :  { %622 = vsyncpa [#allocation4], 1 }
 0x351   :  { %623 = vsyncpa [#allocation7], 1 }
 0x352   :  { %624 = vsyncpa [#allocation5], 1 }

</bundles_post_ra>
